<compile_context>
chip_gen: v7x
topology: tpu7x:2x2x1
jax: 0.10.0
libtpu: 0.0.40
codegen_flags: <defaults>
</compile_context>

<pallas_src>
import jax
import jax.numpy as jnp
from jax.experimental import pallas as pl
from jax.experimental.pallas import tpu as pltpu


def _odefunc_kernel(x_ref, x0_ref, L_ref, weff_ref, o_ref):
    """Per-grid-step body.

    x_ref/x0_ref : (block_b, NT, F)  activations (compute dtype)
    L_ref        : (NT, NT)          precomputed graph+temporal mixing matrix
    weff_ref     : (F, F)            precomputed feature-mixing matrix
    o_ref        : (block_b, NT, F)  output (input dtype)
    """
    bb, NT, F = x_ref.shape
    x = x_ref[...]

    # Graph + temporal mixing: ONE batched MXU contraction (no per-b Python loop,
    # so no unbounded live f32 accumulators / spills).
    Lb = jnp.broadcast_to(L_ref[...], (bb, NT, NT))
    mix = jnp.einsum('bpq,bqf->bpf', Lb, x, preferred_element_type=jnp.float32)

    # Feature mixing: ONE layout-preserving (bb*NT, F) @ (F, F) matmul
    # (weights pushed to the MXU once per grid step).
    feat = jnp.dot(x.reshape(bb * NT, F), weff_ref[...],
                   preferred_element_type=jnp.float32).reshape(bb, NT, F)

    # f32 epilogue: -3x and the x0 residual are kept out of the (possibly bf16)
    # L for accuracy; VPU adds are free under the MXU/overhead-bound regime.
    o_ref[...] = (mix + feat
                  - 3.0 * x.astype(jnp.float32)
                  + x0_ref[...].astype(jnp.float32)).astype(o_ref.dtype)


def precompute_mixing(adj, alpha, w, d, w2, d2):
    """Batch-invariant parameter math, hoisted out of the kernel.

    Call once per ODE step (parameters do not change across solver function
    evaluations) and reuse the result for every odefunc_apply() call.
    """
    f32 = jnp.float32
    N = adj.shape[0]
    T = w2.shape[0]

    alpha_half = 0.5 * jax.nn.sigmoid(alpha.astype(f32))                       # (N,)
    w_f32 = w.astype(f32)
    w_eff = jnp.dot(w_f32 * jnp.clip(d.astype(f32), 0.0, 1.0), w_f32.T)        # (F, F)
    w2_f32 = w2.astype(f32)
    w2_eff = jnp.dot(w2_f32 * jnp.clip(d2.astype(f32), 0.0, 1.0), w2_f32.T)    # (T, T)

    # Dense fold of graph + temporal mixing into one (NT, NT) matrix.
    # TODO(synk): only sensible for small NT (<= ~256). For realistic STGODE
    # graphs keep adj and w2_eff factored (apply adj on an (N, T*F) view and
    # w2_eff.T on a (T, F) view) — the dense kron is O(NT^2) VMEM and ~T× the
    # FLOPs and would blow v7x's 64 MiB VMEM.
    A_big = jnp.kron(adj.astype(f32), jnp.eye(T, dtype=f32))                   # (NT, NT)
    L_mix = (jnp.repeat(alpha_half, T)[:, None] * A_big
             + jnp.kron(jnp.eye(N, dtype=f32), w2_eff.T))                      # (NT, NT)
    return L_mix, w_eff


def _pick_block_b(B, row_bytes, *, target=1 << 20, cap=8 << 20):
    """Smallest divisor of B whose block moves >= ~1 MiB of activations per grid
    step (amortizes the ~600-cycle per-step overhead); collapses to grid=1 for
    small problems (nothing gained from extra grid steps on single-TC chips).
    Caps the block so double-buffered activation blocks stay well inside VMEM."""
    divisors = [d for d in range(1, B + 1) if B % d == 0]
    fitting = [d for d in divisors if d * row_bytes <= cap]
    if not fitting:
        return 1
    for d in fitting:
        if d * row_bytes >= target:
            return d
    return fitting[-1]   # small problem: take the whole batch (grid = 1)


def odefunc_apply(x, x0, L_mix, w_eff, *, block_b=None, compute_dtype=jnp.bfloat16):
    """Apply the ODEFunc forward given precomputed (L_mix, w_eff).

    x, x0: (B, N, T, F). Returns (B, N, T, F) in x.dtype.
    """
    B, N, T, F = x.shape
    NT = N * T
    assert L_mix.shape == (NT, NT) and w_eff.shape == (F, F)

    cd = compute_dtype
    out_dtype = x.dtype
    # Flat, lane-dense activation views (free reshape: last dim F stays minor).
    x_flat = x.reshape(B, NT, F).astype(cd)
    x0_flat = x0.reshape(B, NT, F).astype(cd)
    L_c = L_mix.astype(cd)
    w_c = w_eff.astype(cd)

    row_bytes = NT * F * (2 * jnp.dtype(cd).itemsize + jnp.dtype(out_dtype).itemsize)
    if block_b is None:
        block_b = _pick_block_b(B, row_bytes)
    assert B % block_b == 0, "block_b must divide B"
    grid_b = B // block_b

    # Conservative VMEM estimate: double-buffered activation blocks + resident
    # L / w_eff. Only override the scoped-VMEM limit when the default would be
    # too small (never triggers at the test shape; re-derive per chip — v7x has
    # only 64 MiB physical VMEM).
    vmem_est = 2 * block_b * row_bytes + 2 * (NT * NT + F * F) * jnp.dtype(cd).itemsize
    params = {"dimension_semantics": ("parallel",)}
    if vmem_est > (16 << 20):
        params["vmem_limit_bytes"] = min(int(vmem_est * 1.25) + (2 << 20), 56 << 20)

    act_spec = pl.BlockSpec((block_b, NT, F), lambda b: (b, 0, 0))
    # L / w_eff use constant index maps -> fetched once and kept VMEM-resident.
    # (For large NT additionally use pipeline_mode=pl.Buffered(1) so they are not
    #  double-buffered; irrelevant at NT=128 where L is only tens of KiB.)
    out = pl.pallas_call(
        _odefunc_kernel,
        out_shape=jax.ShapeDtypeStruct((B, NT, F), out_dtype),
        grid=(grid_b,),
        in_specs=[
            act_spec,                                   # x
            act_spec,                                   # x0
            pl.BlockSpec((NT, NT), lambda b: (0, 0)),   # L_mix
            pl.BlockSpec((F, F), lambda b: (0, 0)),     # w_eff
        ],
        out_specs=act_spec,
        compiler_params=pltpu.CompilerParams(**params),
    )(x_flat, x0_flat, L_c, w_c)

    return out.reshape(B, N, T, F)


def odefunc_forward(x, x0, adj, alpha, w, d, w2, d2, *, block_b=None,
                    compute_dtype=jnp.bfloat16):
    """One-shot convenience forward (the PyTorch ODE time `t` is unused)."""
    L_mix, w_eff = precompute_mixing(adj, alpha, w, d, w2, d2)
    return odefunc_apply(x, x0, L_mix, w_eff, block_b=block_b,
                         compute_dtype=compute_dtype)


def odefunc_reference(x, x0, adj, alpha, w, d, w2, d2):
    """Pure-JAX reference matching the PyTorch forward exactly."""
    a = jax.nn.sigmoid(alpha)[None, :, None, None]
    xa = jnp.einsum('ij,kjlm->kilm', adj, x)
    W = (w * jnp.clip(d, 0.0, 1.0)) @ w.T
    xw = jnp.einsum('ijkl,lm->ijkm', x, W)
    W2 = (w2 * jnp.clip(d2, 0.0, 1.0)) @ w2.T
    xw2 = jnp.einsum('ijkl,km->ijml', x, W2)
    return a / 2.0 * xa - x + xw - x + xw2 - x + x0


if __name__ == "__main__":
    B, N, T, F = 2, 16, 8, 128   # batch, num_nodes, temporal_dim, feature_dim

    key = jax.random.PRNGKey(0)
    k1, k2, k3, k4, k5, k6, k7 = jax.random.split(key, 7)

    x = jax.random.normal(k1, (B, N, T, F), jnp.float32)
    x0 = x   # ODEblock sets odefunc.x0 = x before integration

    adj_raw = jax.random.uniform(k2, (N, N), jnp.float32)
    adj = adj_raw / adj_raw.sum(axis=1, keepdims=True)   # row-normalized adjacency

    # Parameter shapes from __init__ (values perturbed deterministically so the
    # clamp / mixing paths are actually exercised).
    alpha = 0.8 * jnp.ones((N,), jnp.float32) + 0.1 * jax.random.normal(k3, (N,))
    w = jnp.eye(F, dtype=jnp.float32) + 0.05 * jax.random.normal(k4, (F, F))
    d = jax.random.uniform(k5, (F,), jnp.float32, minval=-0.2, maxval=1.2)
    w2 = jnp.eye(T, dtype=jnp.float32) + 0.05 * jax.random.normal(k6, (T, T))
    d2 = jax.random.uniform(k7, (T,), jnp.float32, minval=-0.2, maxval=1.2)

    ref = jax.block_until_ready(odefunc_reference(x, x0, adj, alpha, w, d, w2, d2))

    # --- f32 compute path: tight check against the pure-JAX reference ------------
    out_f32 = jax.block_until_ready(
        odefunc_forward(x, x0, adj, alpha, w, d, w2, d2, compute_dtype=jnp.float32))
    assert out_f32.shape == (B, N, T, F)
    err_f32 = float(jnp.max(jnp.abs(out_f32 - ref)))
    assert err_f32 < 1e-3, f"f32 max abs err = {err_f32}"

    # --- bf16 compute path (production config): normalized max-error check -------
    out_bf16 = jax.block_until_ready(
        odefunc_forward(x, x0, adj, alpha, w, d, w2, d2, compute_dtype=jnp.bfloat16))
    assert out_bf16.shape == (B, N, T, F)
    err = float(jnp.max(jnp.abs(out_bf16.astype(jnp.float32) - ref)))
    scale = float(jnp.max(jnp.abs(ref)))
    assert err / scale < 2e-2, f"bf16 normalized max err = {err / scale}"

    print("KERNEL_OK")
</pallas_src>

<mosaic_0001>
module attributes {stable_mosaic.version = 11 : i64} {
  func.func @_odefunc_kernel(%arg0: i32, %arg1: memref<2x128x128xf32, #tpu.memory_space<vmem>>, %arg2: memref<2x128x128xf32, #tpu.memory_space<vmem>>, %arg3: memref<128x128xf32, #tpu.memory_space<vmem>>, %arg4: memref<128x128xf32, #tpu.memory_space<vmem>>, %arg5: memref<2x128x128xf32, #tpu.memory_space<vmem>>) attributes {dimension_semantics = [#tpu.dimension_semantics<parallel>], iteration_bounds = array<i64: 1>, scalar_prefetch = 0 : i64, scratch_operands = 0 : i64, tpu.core_type = #tpu.core_type<tc>, window_params = [{transform_indices = @transform_0, window_bounds = array<i64: 2, 128, 128>}, {transform_indices = @transform_1, window_bounds = array<i64: 2, 128, 128>}, {pipeline_mode = #tpu.pipeline_mode<synchronous>, transform_indices = @transform_2, window_bounds = array<i64: 128, 128>}, {pipeline_mode = #tpu.pipeline_mode<synchronous>, transform_indices = @transform_3, window_bounds = array<i64: 128, 128>}, {transform_indices = @transform_4, window_bounds = array<i64: 2, 128, 128>}]} {
    %c0 = arith.constant 0 : index
    %c0_0 = arith.constant 0 : index
    %c0_1 = arith.constant 0 : index
    %0 = vector.load %arg1[%c0, %c0_0, %c0_1] : memref<2x128x128xf32, #tpu.memory_space<vmem>>, vector<2x128x128xf32>
    %c0_2 = arith.constant 0 : index
    %c0_3 = arith.constant 0 : index
    %1 = vector.load %arg3[%c0_2, %c0_3] : memref<128x128xf32, #tpu.memory_space<vmem>>, vector<128x128xf32>
    %2 = vector.shape_cast %1 : vector<128x128xf32> to vector<1x128x128xf32>
    %3 = vector.broadcast %2 : vector<1x128x128xf32> to vector<2x128x128xf32>
    "tpu.trace_start"() <{level = 10 : i32, message = "bpq,bqf->bpf"}> : () -> ()
    %cst = arith.constant dense<0.000000e+00> : vector<2x128x128xf32>
    %4 = tpu.matmul %3, %0, %cst {dimension_numbers = #tpu.dot_dimension_numbers<[2], [1], [1], [2], [0, 0, 0, 1, 1, 2], [0], [0]>} : vector<2x128x128xf32>, vector<2x128x128xf32>, vector<2x128x128xf32> -> vector<2x128x128xf32>
    "tpu.trace_stop"() : () -> ()
    %5 = vector.shape_cast %0 : vector<2x128x128xf32> to vector<256x128xf32>
    %c0_4 = arith.constant 0 : index
    %c0_5 = arith.constant 0 : index
    %6 = vector.load %arg4[%c0_4, %c0_5] : memref<128x128xf32, #tpu.memory_space<vmem>>, vector<128x128xf32>
    %cst_6 = arith.constant dense<0.000000e+00> : vector<256x128xf32>
    %7 = tpu.matmul %5, %6, %cst_6 {dimension_numbers = #tpu.dot_dimension_numbers<[1], [0], [0], [1], [0, 0, 1, 1], [], []>} : vector<256x128xf32>, vector<128x128xf32>, vector<256x128xf32> -> vector<256x128xf32>
    %8 = vector.shape_cast %7 : vector<256x128xf32> to vector<2x128x128xf32>
    %9 = arith.addf %4, %8 : vector<2x128x128xf32>
    %cst_7 = arith.constant 3.000000e+00 : f32
    %10 = vector.broadcast %cst_7 : f32 to vector<2x128x128xf32>
    %11 = arith.mulf %10, %0 : vector<2x128x128xf32>
    %12 = arith.subf %9, %11 : vector<2x128x128xf32>
    %c0_8 = arith.constant 0 : index
    %c0_9 = arith.constant 0 : index
    %c0_10 = arith.constant 0 : index
    %13 = vector.load %arg2[%c0_8, %c0_9, %c0_10] : memref<2x128x128xf32, #tpu.memory_space<vmem>>, vector<2x128x128xf32>
    %14 = arith.addf %12, %13 : vector<2x128x128xf32>
    %c0_11 = arith.constant 0 : index
    %c0_12 = arith.constant 0 : index
    %c0_13 = arith.constant 0 : index
    %15 = vector.load %arg5[%c0_11, %c0_12, %c0_13] : memref<2x128x128xf32, #tpu.memory_space<vmem>>, vector<2x128x128xf32>
    tpu.vector_store %arg5[%c0_11, %c0_12, %c0_13], %14 {strides = array<i32>} : memref<2x128x128xf32, #tpu.memory_space<vmem>>, vector<2x128x128xf32>,
    return
  }
  func.func @transform_0(%arg0: i32) -> (i32, i32, i32) {
    %c0_i32 = arith.constant 0 : i32
    %c0_i32_0 = arith.constant 0 : i32
    %c0_i32_1 = arith.constant 0 : i32
    return %arg0, %c0_i32, %c0_i32_0 : i32, i32, i32
  }
  func.func @transform_1(%arg0: i32) -> (i32, i32, i32) {
    %c0_i32 = arith.constant 0 : i32
    %c0_i32_0 = arith.constant 0 : i32
    %c0_i32_1 = arith.constant 0 : i32
    return %arg0, %c0_i32, %c0_i32_0 : i32, i32, i32
  }
  func.func @transform_2(%arg0: i32) -> (i32, i32) {
    %c0_i32 = arith.constant 0 : i32
    %c0_i32_0 = arith.constant 0 : i32
    %c0_i32_1 = arith.constant 0 : i32
    return %c0_i32, %c0_i32_0 : i32, i32
  }
  func.func @transform_3(%arg0: i32) -> (i32, i32) {
    %c0_i32 = arith.constant 0 : i32
    %c0_i32_0 = arith.constant 0 : i32
    %c0_i32_1 = arith.constant 0 : i32
    return %c0_i32, %c0_i32_0 : i32, i32
  }
  func.func @transform_4(%arg0: i32) -> (i32, i32, i32) {
    %c0_i32 = arith.constant 0 : i32
    %c0_i32_0 = arith.constant 0 : i32
    %c0_i32_1 = arith.constant 0 : i32
    return %arg0, %c0_i32, %c0_i32_0 : i32, i32, i32
  }
}

</mosaic_0001>

<bundles_post_ra>
// kernel: tpu_custom_call.1
= control target key start
LH: loop header
LB: loop body
LE: loop exit
PB: predicated region body
PF: predicated region fallthrough
CT: control target
= control target key end

     0   :  { %9 = vsyncpa [#allocation3], 0  ;;  %s1697_s0 = inlined_call_operand.hbm [shape: f32[2,128,128], index: 0, kind: input, shape index: {}]   ;;  %s1698_s1 = inlined_call_operand.hbm [shape: f32[2,128,128], index: 1, kind: input, shape index: {}]   ;;  %s1699_s2 = inlined_call_operand.hbm [shape: f32[128,128], index: 2, kind: input, shape index: {}]   ;;  %s1700_s3 = inlined_call_operand.hbm [shape: f32[128,128], index: 3, kind: input, shape index: {}]   ;;  %s1701_s4 = inlined_call_operand.hbm [shape: f32[2,128,128], index: 4, kind: output, shape index: {}]  }
   0x1   :  { %10 = vsyncpa [#allocation6], 0 }
   0x2   :  { %11 = vsyncpa [#allocation9], 0 }
   0x3   :  { %12 = vsyncpa [#allocation4], 0  ;;  %s1388_s15 = smov [#allocation5]   ;;  %s1389_s17 = smov [#allocation2]  }
   0x4   :  { %s30_s16 = sshll.u32 %s1388_s15, 4  ;;  %s18_s18 = sshll.u32 %s1389_s17, 4  ;;  %s31_s16 = int_to_ptr.vmem [resolvable:$true] %s30_s16  ;;  %s1420_s18 = int_to_ptr.vmem [resolvable:$true] %s18_s18 }
   0x5   :  { %s1270_s21 = scalar_lea.hbm %s1698_s1, 4096 }
   0x6   :  { %p1271_p0 = scmp.ne.s32.totalorder %s1698_s1, %s1270_s21  ;;  %p1274_p1 = scmp.lt.u32.totalorder %s1270_s21, %s1698_s1 }
   0x8   :  { %p1276_p2 = pnand %p1274_p1, %p1271_p0 }
   0xa   :  { %1279 = shalt.err (!%p1276_p2)
}
   0xb   :  { %s1280_s26 = scalar_lea.vmem %s31_s16, 4096  ;;  %p1285_p4 = scmp.lt.s32.totalorder %s31_s16, %s31_s16 }
   0xc   :  { %p1281_p3 = scmp.ne.s32.totalorder %s31_s16, %s1280_s26  ;;  %p1286_p5 = scmp.lt.s32.totalorder %s1280_s26, %s1280_s26 }
   0xe   :  { %p1287_p6 = por %p1286_p5, %p1285_p4 }
  0x10   :  { %p1288_p7 = pnand %p1287_p6, %p1281_p3 }
  0x12   :  { %1291 = shalt.err (!%p1288_p7)
}
  0x13   :  { %s1390_s27 = smov 128   ;;  %s1391_s28 = smov 8  }
  0x14   :  { %36 = dma.hbm_to_vmem [thread:$0]  %s1698_s1, 4096, %s31_s16, [#allocation6], %s1390_s27, %s1390_s27, %s1391_s28  }
  0x15   :  { %s1292_s7 = scalar_lea.hbm %s1697_s0, 4096 }
  0x16   :  { %p1293_p8 = scmp.ne.s32.totalorder %s1697_s0, %s1292_s7  ;;  %p1296_p9 = scmp.lt.u32.totalorder %s1292_s7, %s1697_s0 }
  0x18   :  { %p1298_p10 = pnand %p1296_p9, %p1293_p8 }
  0x1a   :  { %1301 = shalt.err (!%p1298_p10)
}
  0x1b   :  { %s1302_s12 = scalar_lea.vmem %s1420_s18, 4096  ;;  %p1307_p12 = scmp.lt.s32.totalorder %s1420_s18, %s1420_s18 }
  0x1c   :  { %p1303_p11 = scmp.ne.s32.totalorder %s1420_s18, %s1302_s12  ;;  %p1308_p13 = scmp.lt.s32.totalorder %s1302_s12, %s1302_s12 }
  0x1e   :  { %p1309_p0 = por %p1308_p13, %p1307_p12 }
  0x20   :  { %p1310_p1 = pnand %p1309_p0, %p1303_p11 }
  0x22   :  { %1313 = shalt.err (!%p1310_p1)
}
  0x23   :  { %24 = dma.hbm_to_vmem [thread:$0]  %s1697_s0, 4096, %s1420_s18, [#allocation3], %s1390_s27, %s1390_s27, %s1391_s28  }
  0x24   :  { %s1392_s14 = smov [#allocation7]   ;;  %s1393_s16 = smov [#allocation8]  }
  0x25   :  { %s42_s15 = sshll.u32 %s1392_s14, 4  ;;  %s54_s17 = sshll.u32 %s1393_s16, 4  ;;  %s43_s15 = int_to_ptr.vmem [resolvable:$true] %s42_s15  ;;  %s1457_s17 = int_to_ptr.vmem [resolvable:$true] %s54_s17 }
  0x26   :  { %s1314_s21 = scalar_lea.hbm %s1699_s2, 2048 }
  0x27   :  { %p1315_p2 = scmp.ne.s32.totalorder %s1699_s2, %s1314_s21  ;;  %p1318_p3 = scmp.lt.u32.totalorder %s1314_s21, %s1699_s2 }
  0x29   :  { %p1320_p4 = pnand %p1318_p3, %p1315_p2 }
  0x2b   :  { %1323 = shalt.err (!%p1320_p4)
}
  0x2c   :  { %s1324_s0 = scalar_lea.vmem %s43_s15, 2048  ;;  %p1329_p6 = scmp.lt.s32.totalorder %s43_s15, %s43_s15 }
  0x2d   :  { %p1325_p5 = scmp.ne.s32.totalorder %s43_s15, %s1324_s0  ;;  %p1330_p7 = scmp.lt.s32.totalorder %s1324_s0, %s1324_s0 }
  0x2f   :  { %p1331_p8 = por %p1330_p7, %p1329_p6 }
  0x31   :  { %p1332_p9 = pnand %p1331_p8, %p1325_p5 }
  0x33   :  { %1335 = shalt.err (!%p1332_p9)
}
  0x34   :  { %48 = dma.hbm_to_vmem [thread:$0]  %s1699_s2, 2048, %s43_s15, [#allocation6], %s1390_s27, %s1390_s27, %s1391_s28  }
  0x35   :  { %s1336_s5 = scalar_lea.hbm %s1700_s3, 2048 }
  0x36   :  { %p1337_p10 = scmp.ne.s32.totalorder %s1700_s3, %s1336_s5  ;;  %p1340_p11 = scmp.lt.u32.totalorder %s1336_s5, %s1700_s3 }
  0x38   :  { %p1342_p12 = pnand %p1340_p11, %p1337_p10 }
  0x3a   :  { %1345 = shalt.err (!%p1342_p12)
}
  0x3b   :  { %s1346_s10 = scalar_lea.vmem %s1457_s17, 2048  ;;  %p1351_p0 = scmp.lt.s32.totalorder %s1457_s17, %s1457_s17 }
  0x3c   :  { %p1347_p13 = scmp.ne.s32.totalorder %s1457_s17, %s1346_s10  ;;  %p1352_p1 = scmp.lt.s32.totalorder %s1346_s10, %s1346_s10 }
  0x3e   :  { %p1353_p2 = por %p1352_p1, %p1351_p0 }
  0x40   :  { %p1354_p3 = pnand %p1353_p2, %p1347_p13 }
  0x42   :  { %1357 = shalt.err (!%p1354_p3)
}
  0x43   :  { %60 = dma.hbm_to_vmem [thread:$0]  %s1700_s3, 2048, %s1457_s17, [#allocation9], %s1390_s27, %s1390_s27, %s1391_s28  }
  0x44   :  { %1380 = dma.done.wait [#allocation3], 4096  }
  0x45   :  { %1381 = vsyncadd [#allocation3], 4294963200 }
  0x46   :  { %1382 = dma.done.wait [#allocation6], 6144  }
  0x47   :  { %1383 = vsyncadd [#allocation6], 4294961152 }
  0x48   :  { %1384 = dma.done.wait [#allocation9], 2048  }
  0x49   :  { %1385 = vsyncadd [#allocation9], 4294965248  ;;  %v121_v0 = vld [vmem:[#allocation8] sm:$0xff]  ;;  %v122_v1 = vld [vmem:[#allocation8 + $0x8] sm:$0xff]  ;;  %s1394_s3 = smov [#allocation10]  }
  0x4a   :  { %v1494_v2 = vld [vmem:[#allocation2] sm:$0xff]  ;;  %v1135_v3 = vpack.c.bf16 %v122_v1, %v121_v0  ;;  %v1496_v4 = vld [vmem:[#allocation2 + $0x8] sm:$0xff]  ;;  %v123_v5 = vld [vmem:[#allocation8 + $0x10] sm:$0xff]  ;;  %s817_s12 = sshll.u32 %s1394_s3, 4  ;;  %s818_s12 = int_to_ptr.vmem [resolvable:$true] %s817_s12 }
  0x4b   :  { %v124_v6 = vld [vmem:[#allocation8 + $0x18] sm:$0xff]  ;;  %975 = vmatprep.mubr.f32.mxu1 %v1494_v2  ;;  %v1167_v7 = vpack.c.bf16 %v1496_v4, %v1494_v2  ;;  %v1501_v9 = vld [vmem:[#allocation2 + $0x10] sm:$0xff]  ;;  %v125_v11 = vld [vmem:[#allocation8 + $0x20] sm:$0xff]  ;;  %s1358_s1 = scalar_lea.vmem %s818_s12, 4096  ;;  %p1363_p5 = scmp.lt.s32.totalorder %s818_s12, %s818_s12 }
  0x4c   :  { %v1139_v8 = vpack.c.bf16 %v124_v6, %v123_v5  ;;  %v1503_v10 = vld [vmem:[#allocation2 + $0x18] sm:$0xff]  ;;  %1136 = vmatprep.subr.bf16.mxu1 %v1135_v3  ;;  %v126_v13 = vld [vmem:[#allocation8 + $0x28] sm:$0xff]  ;;  %v1507_v14 = vld [vmem:[#allocation2 + $0x20] sm:$0xff]  ;;  %p1359_p4 = scmp.ne.s32.totalorder %s818_s12, %s1358_s1  ;;  %p1364_p6 = scmp.lt.s32.totalorder %s1358_s1, %s1358_s1 }
  0x4d   :  { %v1171_v12 = vpack.c.bf16 %v1503_v10, %v1501_v9  ;;  %v1509_v15 = vld [vmem:[#allocation2 + $0x28] sm:$0xff]  ;;  %1168 = vmatprep.subr.bf16.mxu0 %v1167_v7  ;;  %1138 = vmatpush3.bf16.msra.mxu1 %v1135_v3  ;;  %v1143_v16 = vpack.c.bf16 %v126_v13, %v125_v11  ;;  %v127_v18 = vld [vmem:[#allocation8 + $0x30] sm:$0xff]  ;;  %v128_v19 = vld [vmem:[#allocation8 + $0x38] sm:$0xff] }
  0x4e   :  { %1170 = vmatpush3.bf16.msra.mxu0 %v1167_v7  ;;  %1140 = vmatprep.subr.bf16.mxu1 %v1139_v8  ;;  %v1175_v17 = vpack.c.bf16 %v1509_v15, %v1507_v14  ;;  %v1513_v20 = vld [vmem:[#allocation2 + $0x30] sm:$0xff]  ;;  %v1515_v21 = vld [vmem:[#allocation2 + $0x38] sm:$0xff]  ;;  %v1147_v22 = vpack.c.bf16 %v128_v19, %v127_v18  ;;  %v129_v24 = vld [vmem:[#allocation8 + $0x40] sm:$0xff]  ;;  %p1365_p7 = por %p1364_p6, %p1363_p5 }
  0x4f   :  { %1172 = vmatprep.subr.bf16.mxu0 %v1171_v12  ;;  %v1179_v23 = vpack.c.bf16 %v1515_v21, %v1513_v20  ;;  %v130_v25 = vld [vmem:[#allocation8 + $0x48] sm:$0xff]  ;;  %v1519_v26 = vld [vmem:[#allocation7] sm:$0xff]  ;;  %v131_v31 = vld [vmem:[#allocation8 + $0x50] sm:$0xff] }
  0x50   :  { %v1521_v27 = vld [vmem:[#allocation2 + $0x40] sm:$0xff]  ;;  %v1523_v28 = vld [vmem:[#allocation2 + $0x48] sm:$0xff]  ;;  %1055 = vmatprep.mubr.f32.mxu0 %v1519_v26  ;;  %v1151_v29 = vpack.c.bf16 %v130_v25, %v129_v24  ;;  %v132_v32 = vld [vmem:[#allocation8 + $0x58] sm:$0xff]  ;;  %p1366_p8 = pnand %p1365_p7, %p1359_p4 }
  0x51   :  { %1142 = vmatpush3.bf16.msra.mxu1 %v1139_v8  ;;  %v1183_v30 = vpack.c.bf16 %v1523_v28, %v1521_v27  ;;  %v1528_v33 = vld [vmem:[#allocation2 + $0x50] sm:$0xff]  ;;  %v1530_v34 = vld [vmem:[#allocation2 + $0x58] sm:$0xff]  ;;  %v1155_v35 = vpack.c.bf16 %v132_v32, %v131_v31  ;;  %v133_v37 = vld [vmem:[#allocation8 + $0x60] sm:$0xff] }
  0x52   :  { %1174 = vmatpush3.bf16.msra.mxu0 %v1171_v12  ;;  %1144 = vmatprep.subr.bf16.mxu1 %v1143_v16  ;;  %v1187_v36 = vpack.c.bf16 %v1530_v34, %v1528_v33  ;;  %v134_v38 = vld [vmem:[#allocation8 + $0x68] sm:$0xff]  ;;  %v1534_v39 = vld [vmem:[#allocation2 + $0x60] sm:$0xff]  ;;  %v135_v43 = vld [vmem:[#allocation8 + $0x70] sm:$0xff] }
  0x53   :  { %1176 = vmatprep.subr.bf16.mxu0 %v1175_v17  ;;  %v1536_v40 = vld [vmem:[#allocation2 + $0x68] sm:$0xff]  ;;  %v1159_v41 = vpack.c.bf16 %v134_v38, %v133_v37  ;;  %v136_v44 = vld [vmem:[#allocation8 + $0x78] sm:$0xff]  ;;  %v1540_v45 = vld [vmem:[#allocation2 + $0x70] sm:$0xff]  ;;  %v653_v37 = vmul.f32 3.0, %v1496_v4 }
  0x54   :  { %v1191_v42 = vpack.c.bf16 %v1536_v40, %v1534_v39  ;;  %v1542_v46 = vld [vmem:[#allocation2 + $0x78] sm:$0xff]  ;;  %v1163_v47 = vpack.c.bf16 %v136_v44, %v135_v43  ;;  %v1546_v49 = vld [vmem:[#allocation2 + $0x80] sm:$0xff]  ;;  %v1548_v50 = vld [vmem:[#allocation2 + $0x88] sm:$0xff] }
  0x55   :  { %1146 = vmatpush3.bf16.msra.mxu1 %v1143_v16  ;;  %v1195_v48 = vpack.c.bf16 %v1542_v46, %v1540_v45  ;;  %v1199_v51 = vpack.c.bf16 %v1548_v50, %v1546_v49  ;;  %v1552_v52 = vld [vmem:[#allocation2 + $0x90] sm:$0xff]  ;;  %v1554_v53 = vld [vmem:[#allocation2 + $0x98] sm:$0xff]  ;;  %v1556_v54 = vld [vmem:[#allocation7 + $0x8] sm:$0xff] }
  0x56   :  { %1178 = vmatpush3.bf16.msra.mxu0 %v1175_v17  ;;  %1148 = vmatprep.subr.bf16.mxu1 %v1147_v22  ;;  %v1558_v55 = vld [vmem:[#allocation7 + $0x10] sm:$0xff]  ;;  %v1203_v56 = vpack.c.bf16 %v1554_v53, %v1552_v52  ;;  %v1563_v57 = vld [vmem:[#allocation2 + $0xa0] sm:$0xff]  ;;  %v1565_v58 = vld [vmem:[#allocation2 + $0xa8] sm:$0xff] }
  0x57   :  { %1180 = vmatprep.subr.bf16.mxu0 %v1179_v23  ;;  %v1570_v59 = vld [vmem:[#allocation7 + $0x18] sm:$0xff]  ;;  %v1572_v60 = vld [vmem:[#allocation7 + $0x20] sm:$0xff]  ;;  %v1207_v61 = vpack.c.bf16 %v1565_v58, %v1563_v57  ;;  %v1577_v62 = vld [vmem:[#allocation2 + $0xb0] sm:$0xff] }
  0x58   :  { %v1579_v63 = vld [vmem:[#allocation2 + $0xb8] sm:$0xff]  ;;  %v1584_v0 = vld [vmem:[#allocation7 + $0x28] sm:$0xff]  ;;  %v1586_v1 = vld [vmem:[#allocation7 + $0x30] sm:$0xff] }
  0x59   :  { %1150 = vmatpush3.bf16.msra.mxu1 %v1147_v22  ;;  %v1211_v3 = vpack.c.bf16 %v1579_v63, %v1577_v62  ;;  %v1591_v5 = vld [vmem:[#allocation2 + $0xc0] sm:$0xff]  ;;  %v1593_v6 = vld [vmem:[#allocation2 + $0xc8] sm:$0xff]  ;;  %v112_v7 = vld [vmem:[#allocation7 + $0x38] sm:$0xff] }
  0x5a   :  { %1182 = vmatpush3.bf16.msra.mxu0 %v1179_v23  ;;  %1152 = vmatprep.subr.bf16.mxu1 %v1151_v29  ;;  %v113_v8 = vld [vmem:[#allocation7 + $0x40] sm:$0xff]  ;;  %v1215_v11 = vpack.c.bf16 %v1593_v6, %v1591_v5  ;;  %v1601_v12 = vld [vmem:[#allocation2 + $0xd0] sm:$0xff]  ;;  %v1603_v13 = vld [vmem:[#allocation2 + $0xd8] sm:$0xff] }
  0x5b   :  { %1184 = vmatprep.subr.bf16.mxu0 %v1183_v30  ;;  %v114_v16 = vld [vmem:[#allocation7 + $0x48] sm:$0xff]  ;;  %v115_v17 = vld [vmem:[#allocation7 + $0x50] sm:$0xff]  ;;  %v1219_v18 = vpack.c.bf16 %v1603_v13, %v1601_v12  ;;  %v1609_v19 = vld [vmem:[#allocation2 + $0xe0] sm:$0xff] }
  0x5c   :  { %v1611_v22 = vld [vmem:[#allocation2 + $0xe8] sm:$0xff]  ;;  %v116_v23 = vld [vmem:[#allocation7 + $0x58] sm:$0xff]  ;;  %v117_v24 = vld [vmem:[#allocation7 + $0x60] sm:$0xff] }
  0x5d   :  { %1154 = vmatpush3.bf16.msra.mxu1 %v1151_v29  ;;  %v1223_v25 = vpack.c.bf16 %v1611_v22, %v1609_v19  ;;  %v1617_v29 = vld [vmem:[#allocation2 + $0xf0] sm:$0xff]  ;;  %v118_v31 = vld [vmem:[#allocation7 + $0x68] sm:$0xff] }
  0x5e   :  { %1186 = vmatpush3.bf16.msra.mxu0 %v1183_v30  ;;  %1156 = vmatprep.subr.bf16.mxu1 %v1155_v35  ;;  %v1619_v30 = vld [vmem:[#allocation2 + $0xf8] sm:$0xff]  ;;  %v119_v32 = vld [vmem:[#allocation7 + $0x70] sm:$0xff] }
  0x5f   :  { %1188 = vmatprep.subr.bf16.mxu0 %v1187_v36 }
  0x61   :  { %1158 = vmatpush3.bf16.msra.mxu1 %v1155_v35  ;;  %v1227_v35 = vpack.c.bf16 %v1619_v30, %v1617_v29 }
  0x62   :  { %1190 = vmatpush3.bf16.msra.mxu0 %v1187_v36  ;;  %1160 = vmatprep.subr.bf16.mxu1 %v1159_v41  ;;  %v120_v36 = vld [vmem:[#allocation7 + $0x78] sm:$0xff] }
  0x63   :  { %1192 = vmatprep.subr.bf16.mxu0 %v1191_v42 }
  0x65   :  { %1162 = vmatpush3.bf16.msra.mxu1 %v1159_v41 }
  0x66   :  { %1194 = vmatpush3.bf16.msra.mxu0 %v1191_v42  ;;  %1164 = vmatprep.subr.bf16.mxu1 %v1163_v47  ;;  %v652_v42 = vmul.f32 3.0, %v1494_v2 }
  0x67   :  { %1196 = vmatprep.subr.bf16.mxu0 %v1195_v48 }
  0x69   :  { %1166 = vmatpush3.bf16.msra.mxu1 %v1163_v47  ;;  %v717_v47 = vld [vmem:[#allocation5 + $0x8] sm:$0xff] }
  0x6a   :  { %1198 = vmatpush3.bf16.msra.mxu0 %v1195_v48 }
  0x6b   :  { %1200 = vmatprep.subr.bf16.mxu0 %v1199_v51 }
  0x6c   :  { %976 = vmatmul.mubr.f32.vlgmr.msra.gmra.mrb[0].mxu1 %v1496_v4 }
  0x6d   :  { %1056 = vmatmul.mubr.f32.vlgmr.msra.gmra.mrb[0].mxu0 %v1556_v54  ;;  %978 = vmatprep.mubr.f32.mxu1 %v1501_v9 }
  0x6e   :  { %1202 = vmatpush3.bf16.msra.mxu0 %v1199_v51  ;;  %1058 = vmatprep.mubr.f32.mxu0 %v1558_v55 }
  0x6f   :  { %1204 = vmatprep.subr.bf16.mxu0 %v1203_v56 }
  0x70   :  { %979 = vmatmul.mubr.f32.gmra.mrb[2].mxu1 %v1503_v10 }
  0x71   :  { %1059 = vmatmul.mubr.f32.gmra.mrb[2].mxu0 %v1570_v59  ;;  %981 = vmatprep.mubr.f32.mxu1 %v1507_v14 }
  0x72   :  { %1206 = vmatpush3.bf16.msra.mxu0 %v1203_v56  ;;  %1061 = vmatprep.mubr.f32.mxu0 %v1572_v60  ;;  %v655_v56 = vmul.f32 3.0, %v1503_v10 }
  0x73   :  { %1208 = vmatprep.subr.bf16.mxu0 %v1207_v61 }
  0x74   :  { %982 = vmatmul.mubr.f32.gmra.mrb[4].mxu1 %v1509_v15 }
  0x75   :  { %1062 = vmatmul.mubr.f32.gmra.mrb[4].mxu0 %v1584_v0  ;;  %984 = vmatprep.mubr.f32.mxu1 %v1513_v20 }
  0x76   :  { %1210 = vmatpush3.bf16.msra.mxu0 %v1207_v61  ;;  %1064 = vmatprep.mubr.f32.mxu0 %v1586_v1 }
  0x77   :  { %1212 = vmatprep.subr.bf16.mxu0 %v1211_v3 }
  0x78   :  { %985 = vmatmul.mubr.f32.gmra.mrb[6].mxu1 %v1515_v21 }
  0x79   :  { %1065 = vmatmul.mubr.f32.gmra.mrb[6].mxu0 %v112_v7  ;;  %987 = vmatprep.mubr.f32.mxu1 %v1521_v27 }
  0x7a   :  { %1214 = vmatpush3.bf16.msra.mxu0 %v1211_v3  ;;  %1067 = vmatprep.mubr.f32.mxu0 %v113_v8 }
  0x7b   :  { %1216 = vmatprep.subr.bf16.mxu0 %v1215_v11 }
  0x7c   :  { %988 = vmatmul.mubr.f32.gmra.mrb[8].mxu1 %v1523_v28 }
  0x7d   :  { %1068 = vmatmul.mubr.f32.gmra.mrb[8].mxu0 %v114_v16  ;;  %990 = vmatprep.mubr.f32.mxu1 %v1528_v33 }
  0x7e   :  { %1218 = vmatpush3.bf16.msra.mxu0 %v1215_v11  ;;  %1070 = vmatprep.mubr.f32.mxu0 %v115_v17 }
  0x7f   :  { %1220 = vmatprep.subr.bf16.mxu0 %v1219_v18 }
  0x80   :  { %991 = vmatmul.mubr.f32.gmra.mrb[10].mxu1 %v1530_v34 }
  0x81   :  { %1071 = vmatmul.mubr.f32.gmra.mrb[10].mxu0 %v116_v23  ;;  %993 = vmatprep.mubr.f32.mxu1 %v1534_v39 }
  0x82   :  { %1222 = vmatpush3.bf16.msra.mxu0 %v1219_v18  ;;  %1073 = vmatprep.mubr.f32.mxu0 %v117_v24  ;;  %v657_v18 = vmul.f32 3.0, %v1509_v15 }
  0x83   :  { %1224 = vmatprep.subr.bf16.mxu0 %v1223_v25 }
  0x84   :  { %994 = vmatmul.mubr.f32.gmra.mrb[12].mxu1 %v1536_v40 }
  0x85   :  { %1074 = vmatmul.mubr.f32.gmra.mrb[12].mxu0 %v118_v31  ;;  %996 = vmatprep.mubr.f32.mxu1 %v1540_v45 }
  0x86   :  { %1226 = vmatpush3.bf16.msra.mxu0 %v1223_v25  ;;  %1076 = vmatprep.mubr.f32.mxu0 %v119_v32  ;;  %v656_v25 = vmul.f32 3.0, %v1507_v14 }
  0x87   :  { %1228 = vmatprep.subr.bf16.mxu0 %v1227_v35 }
  0x88   :  { %997 = vmatmul.mubr.f32.gmra.mrb[14].mxu1 %v1542_v46 }
  0x89   :  { %1077 = vmatmul.mubr.f32.gmra.mrb[14].mxu0 %v120_v36  ;;  %999 = vmatprep.mubr.f32.mxu1 %v1546_v49 }
  0x8a   :  { %1230 = vmatpush3.bf16.msra.mxu0 %v1227_v35  ;;  %1111 = vmatprep.mubr.f32.mxu0 %v1519_v26 }
  0x8c   :  { %1000 = vmatmul.mubr.f32.gmra.mrb[16].mxu1 %v1548_v50 }
  0x8d   :  { %1112 = vmatmul.mubr.f32.vlgmr.msra.gmra.mrb[16].mxu0 %v1556_v54  ;;  %1002 = vmatprep.mubr.f32.mxu1 %v1552_v52  ;;  %v716_v54 = vld [vmem:[#allocation5] sm:$0xff] }
  0x8e   :  { %1114 = vmatprep.mubr.f32.mxu0 %v1558_v55 }
  0x90   :  { %1003 = vmatmul.mubr.f32.gmra.mrb[18].mxu1 %v1554_v53 }
  0x91   :  { %1115 = vmatmul.mubr.f32.gmra.mrb[18].mxu0 %v1570_v59  ;;  %1005 = vmatprep.mubr.f32.mxu1 %v1563_v57 }
  0x92   :  { %1117 = vmatprep.mubr.f32.mxu0 %v1572_v60 }
  0x94   :  { %1006 = vmatmul.mubr.f32.gmra.mrb[20].mxu1 %v1565_v58 }
  0x95   :  { %1118 = vmatmul.mubr.f32.gmra.mrb[20].mxu0 %v1584_v0  ;;  %1008 = vmatprep.mubr.f32.mxu1 %v1577_v62  ;;  %v654_v0 = vmul.f32 3.0, %v1501_v9 }
  0x96   :  { %1120 = vmatprep.mubr.f32.mxu0 %v1586_v1 }
  0x98   :  { %1009 = vmatmul.mubr.f32.gmra.mrb[22].mxu1 %v1579_v63 }
  0x99   :  { %1121 = vmatmul.mubr.f32.gmra.mrb[22].mxu0 %v112_v7  ;;  %1011 = vmatprep.mubr.f32.mxu1 %v1591_v5 }
  0x9a   :  { %1123 = vmatprep.mubr.f32.mxu0 %v113_v8  ;;  %v719_v8 = vld [vmem:[#allocation5 + $0x18] sm:$0xff] }
  0x9c   :  { %1012 = vmatmul.mubr.f32.gmra.mrb[24].mxu1 %v1593_v6 }
  0x9d   :  { %1124 = vmatmul.mubr.f32.gmra.mrb[24].mxu0 %v114_v16  ;;  %1014 = vmatprep.mubr.f32.mxu1 %v1601_v12  ;;  %v718_v16 = vld [vmem:[#allocation5 + $0x10] sm:$0xff] }
  0x9e   :  { %1126 = vmatprep.mubr.f32.mxu0 %v115_v17 }
  0xa0   :  { %1015 = vmatmul.mubr.f32.gmra.mrb[26].mxu1 %v1603_v13 }
  0xa1   :  { %1127 = vmatmul.mubr.f32.gmra.mrb[26].mxu0 %v116_v23  ;;  %1017 = vmatprep.mubr.f32.mxu1 %v1609_v19 }
  0xa2   :  { %1129 = vmatprep.mubr.f32.mxu0 %v117_v24 }
  0xa4   :  { %1018 = vmatmul.mubr.f32.gmra.mrb[28].mxu1 %v1611_v22 }
  0xa5   :  { %1130 = vmatmul.mubr.f32.gmra.mrb[28].mxu0 %v118_v31  ;;  %1020 = vmatprep.mubr.f32.mxu1 %v1617_v29 }
  0xa6   :  { %1132 = vmatprep.mubr.f32.mxu0 %v119_v32 }
  0xa8   :  { %1021 = vmatmul.mubr.f32.gmra.mrb[30].mxu1 %v1619_v30 }
  0xa9   :  { %1133 = vmatmul.mubr.f32.gmra.mrb[30].mxu0 %v120_v36  ;;  %v721_v36 = vld [vmem:[#allocation5 + $0x28] sm:$0xff] }
 0x13f   :  { %v977_v26 = vpop.f32.mrb[0].mxu1 }
 0x140   :  { %v1057_v38 = vpop.f32.mrb[0].mxu0  ;;  %v203_v41 = vpop.f32.mrb[1].mxu1 }
 0x141   :  { %v434_v43 = vadd.f32 %v1057_v38, %v977_v26  ;;  %v428_v44 = vpop.f32.mrb[1].mxu0  ;;  %v720_v38 = vld [vmem:[#allocation5 + $0x20] sm:$0xff] }
 0x142   :  { %v429_v48 = vadd.f32 %v428_v44, %v203_v41 }
 0x143   :  { %v685_v51 = vsub.f32 %v434_v43, %v653_v37  ;;  %v980_v55 = vpop.f32.mrb[2].mxu1 }
 0x144   :  { %v684_v59 = vsub.f32 %v429_v48, %v652_v42  ;;  %v1060_v60 = vpop.f32.mrb[2].mxu0  ;;  %v213_v61 = vpop.f32.mrb[3].mxu1  ;;  %v659_v42 = vmul.f32 3.0, %v1515_v21 }
 0x145   :  { %v749_v1 = vadd.f32 %v717_v47, %v685_v51  ;;  %v444_v4 = vadd.f32 %v1060_v60, %v980_v55  ;;  %v438_v3 = vpop.f32.mrb[3].mxu0  ;;  %v658_v47 = vmul.f32 3.0, %v1513_v20  ;;  %v723_v55 = vld [vmem:[#allocation5 + $0x38] sm:$0xff]  ;;  %v722_v60 = vld [vmem:[#allocation5 + $0x30] sm:$0xff] }
 0x146   :  { %v748_v7 = vadd.f32 %v716_v54, %v684_v59  ;;  %v439_v2 = vadd.f32 %v438_v3, %v213_v61  ;;  %v660_v3 = vmul.f32 3.0, %v1521_v27 }
 0x147   :  { %781 = vst [vmem:[#allocation10 + $0x8] sm:$0xff] %v749_v1  ;;  %v687_v11 = vsub.f32 %v444_v4, %v655_v56  ;;  %v983_v17 = vpop.f32.mrb[4].mxu1 }
 0x148   :  { %780 = vst [vmem:[#allocation10] sm:$0xff] %v748_v7  ;;  %v686_v23 = vsub.f32 %v439_v2, %v654_v0  ;;  %v1063_v10 = vpop.f32.mrb[4].mxu0  ;;  %v223_v24 = vpop.f32.mrb[5].mxu1  ;;  %v661_v0 = vmul.f32 3.0, %v1523_v28 }
 0x149   :  { %v751_v31 = vadd.f32 %v719_v8, %v687_v11  ;;  %v454_v9 = vadd.f32 %v1063_v10, %v983_v17  ;;  %v448_v32 = vpop.f32.mrb[5].mxu0  ;;  %v725_v11 = vld [vmem:[#allocation5 + $0x48] sm:$0xff]  ;;  %v663_v10 = vmul.f32 3.0, %v1530_v34 }
 0x14a   :  { %v750_v35 = vadd.f32 %v718_v16, %v686_v23  ;;  %v449_v26 = vadd.f32 %v448_v32, %v223_v24 }
 0x14b   :  { %783 = vst [vmem:[#allocation10 + $0x18] sm:$0xff] %v751_v31  ;;  %v689_v37 = vsub.f32 %v454_v9, %v657_v18  ;;  %v986_v41 = vpop.f32.mrb[6].mxu1  ;;  %v724_v18 = vld [vmem:[#allocation5 + $0x40] sm:$0xff]  ;;  %v662_v31 = vmul.f32 3.0, %v1528_v33 }
 0x14c   :  { %782 = vst [vmem:[#allocation10 + $0x10] sm:$0xff] %v750_v35  ;;  %v688_v15 = vsub.f32 %v449_v26, %v656_v25  ;;  %v1066_v43 = vpop.f32.mrb[6].mxu0  ;;  %v233_v44 = vpop.f32.mrb[7].mxu1 }
 0x14d   :  { %v753_v48 = vadd.f32 %v721_v36, %v689_v37  ;;  %v464_v14 = vadd.f32 %v1066_v43, %v986_v41  ;;  %v458_v51 = vpop.f32.mrb[7].mxu0  ;;  %v727_v36 = vld [vmem:[#allocation5 + $0x58] sm:$0xff] }
 0x14e   :  { %v752_v54 = vadd.f32 %v720_v38, %v688_v15  ;;  %v459_v56 = vadd.f32 %v458_v51, %v233_v44  ;;  %v726_v38 = vld [vmem:[#allocation5 + $0x50] sm:$0xff]  ;;  %v664_v44 = vmul.f32 3.0, %v1534_v39  ;;  %v729_v51 = vld [vmem:[#allocation5 + $0x68] sm:$0xff] }
 0x14f   :  { %785 = vst [vmem:[#allocation10 + $0x28] sm:$0xff] %v753_v48  ;;  %v691_v59 = vsub.f32 %v464_v14, %v659_v42  ;;  %v989_v61 = vpop.f32.mrb[8].mxu1  ;;  %v665_v42 = vmul.f32 3.0, %v1536_v40 }
 0x150   :  { %784 = vst [vmem:[#allocation10 + $0x20] sm:$0xff] %v752_v54  ;;  %v690_v21 = vsub.f32 %v459_v56, %v658_v47  ;;  %v1069_v1 = vpop.f32.mrb[8].mxu0  ;;  %v243_v4 = vpop.f32.mrb[9].mxu1  ;;  %v728_v56 = vld [vmem:[#allocation5 + $0x60] sm:$0xff] }
 0x151   :  { %v755_v7 = vadd.f32 %v723_v55, %v691_v59  ;;  %v474_v20 = vadd.f32 %v1069_v1, %v989_v61  ;;  %v468_v8 = vpop.f32.mrb[9].mxu0 }
 0x152   :  { %v754_v2 = vadd.f32 %v722_v60, %v690_v21  ;;  %v469_v16 = vadd.f32 %v468_v8, %v243_v4  ;;  %v667_v60 = vmul.f32 3.0, %v1542_v46  ;;  %v666_v21 = vmul.f32 3.0, %v1540_v45 }
 0x153   :  { %787 = vst [vmem:[#allocation10 + $0x38] sm:$0xff] %v755_v7  ;;  %v693_v17 = vsub.f32 %v474_v20, %v661_v0  ;;  %v992_v23 = vpop.f32.mrb[10].mxu1  ;;  %v731_v7 = vld [vmem:[#allocation5 + $0x78] sm:$0xff] }
 0x154   :  { %786 = vst [vmem:[#allocation10 + $0x30] sm:$0xff] %v754_v2  ;;  %v692_v28 = vsub.f32 %v469_v16, %v660_v3  ;;  %v1072_v24 = vpop.f32.mrb[10].mxu0  ;;  %v253_v25 = vpop.f32.mrb[11].mxu1  ;;  %v730_v2 = vld [vmem:[#allocation5 + $0x70] sm:$0xff]  ;;  %v669_v16 = vmul.f32 3.0, %v1548_v50 }
 0x155   :  { %v757_v9 = vadd.f32 %v725_v11, %v693_v17  ;;  %v484_v27 = vadd.f32 %v1072_v24, %v992_v23  ;;  %v478_v32 = vpop.f32.mrb[11].mxu0  ;;  %v668_v23 = vmul.f32 3.0, %v1546_v49 }
 0x156   :  { %v756_v35 = vadd.f32 %v724_v18, %v692_v28  ;;  %v479_v26 = vadd.f32 %v478_v32, %v253_v25  ;;  %v733_v25 = vld [vmem:[#allocation5 + $0x88] sm:$0xff] }
 0x157   :  { %789 = vst [vmem:[#allocation10 + $0x48] sm:$0xff] %v757_v9  ;;  %v695_v37 = vsub.f32 %v484_v27, %v663_v10  ;;  %v995_v41 = vpop.f32.mrb[12].mxu1  ;;  %v732_v27 = vld [vmem:[#allocation5 + $0x80] sm:$0xff] }
 0x158   :  { %788 = vst [vmem:[#allocation10 + $0x40] sm:$0xff] %v756_v35  ;;  %v694_v34 = vsub.f32 %v479_v26, %v662_v31  ;;  %v1075_v15 = vpop.f32.mrb[12].mxu0  ;;  %v263_v43 = vpop.f32.mrb[13].mxu1  ;;  %v671_v35 = vmul.f32 3.0, %v1554_v53 }
 0x159   :  { %v759_v47 = vadd.f32 %v727_v36, %v695_v37  ;;  %v494_v33 = vadd.f32 %v1075_v15, %v995_v41  ;;  %v488_v48 = vpop.f32.mrb[13].mxu0  ;;  %v670_v37 = vmul.f32 3.0, %v1552_v52 }
 0x15a   :  { %v758_v14 = vadd.f32 %v726_v38, %v694_v34  ;;  %v489_v54 = vadd.f32 %v488_v48, %v263_v43  ;;  %v735_v34 = vld [vmem:[#allocation5 + $0x98] sm:$0xff] }
 0x15b   :  { %791 = vst [vmem:[#allocation10 + $0x58] sm:$0xff] %v759_v47  ;;  %v697_v55 = vsub.f32 %v494_v33, %v665_v42  ;;  %v998_v59 = vpop.f32.mrb[14].mxu1  ;;  %v673_v33 = vmul.f32 3.0, %v1565_v58 }
 0x15c   :  { %790 = vst [vmem:[#allocation10 + $0x50] sm:$0xff] %v758_v14  ;;  %v696_v40 = vsub.f32 %v489_v54, %v664_v44  ;;  %v1078_v61 = vpop.f32.mrb[14].mxu0  ;;  %v273_v0 = vpop.f32.mrb[15].mxu1  ;;  %v734_v44 = vld [vmem:[#allocation5 + $0x90] sm:$0xff] }
 0x15d   :  { %v761_v1 = vadd.f32 %v729_v51, %v697_v55  ;;  %v504_v39 = vadd.f32 %v1078_v61, %v998_v59  ;;  %v498_v4 = vpop.f32.mrb[15].mxu0  ;;  %v672_v51 = vmul.f32 3.0, %v1563_v57  ;;  %v737_v59 = vld [vmem:[#allocation5 + $0xa8] sm:$0xff]  ;;  %v736_v61 = vld [vmem:[#allocation5 + $0xa0] sm:$0xff] }
 0x15e   :  { %v760_v3 = vadd.f32 %v728_v56, %v696_v40  ;;  %v499_v20 = vadd.f32 %v498_v4, %v273_v0  ;;  %v674_v4 = vmul.f32 3.0, %v1577_v62 }
 0x15f   :  { %793 = vst [vmem:[#allocation10 + $0x68] sm:$0xff] %v761_v1  ;;  %v699_v8 = vsub.f32 %v504_v39, %v667_v60  ;;  %v1001_v11 = vpop.f32.mrb[16].mxu1 }
 0x160   :  { %792 = vst [vmem:[#allocation10 + $0x60] sm:$0xff] %v760_v3  ;;  %v698_v46 = vsub.f32 %v499_v20, %v666_v21  ;;  %v1113_v17 = vpop.f32.mrb[16].mxu0  ;;  %v283_v18 = vpop.f32.mrb[17].mxu1  ;;  %v675_v21 = vmul.f32 3.0, %v1579_v63 }
 0x161   :  { %v763_v10 = vadd.f32 %v731_v7, %v699_v8  ;;  %v579_v45 = vadd.f32 %v1113_v17, %v1001_v11  ;;  %v573_v28 = vpop.f32.mrb[17].mxu0  ;;  %v739_v8 = vld [vmem:[#allocation5 + $0xb8] sm:$0xff]  ;;  %v677_v17 = vmul.f32 3.0, %v1593_v6 }
 0x162   :  { %v762_v24 = vadd.f32 %v730_v2, %v698_v46  ;;  %v574_v31 = vadd.f32 %v573_v28, %v283_v18 }
 0x163   :  { %795 = vst [vmem:[#allocation10 + $0x78] sm:$0xff] %v763_v10  ;;  %v701_v9 = vsub.f32 %v579_v45, %v669_v16  ;;  %v1004_v32 = vpop.f32.mrb[18].mxu1  ;;  %v738_v16 = vld [vmem:[#allocation5 + $0xb0] sm:$0xff]  ;;  %v676_v10 = vmul.f32 3.0, %v1591_v5 }
 0x164   :  { %794 = vst [vmem:[#allocation10 + $0x70] sm:$0xff] %v762_v24  ;;  %v700_v50 = vsub.f32 %v574_v31, %v668_v23  ;;  %v1116_v36 = vpop.f32.mrb[18].mxu0  ;;  %v293_v26 = vpop.f32.mrb[19].mxu1 }
 0x165   :  { %v765_v38 = vadd.f32 %v733_v25, %v701_v9  ;;  %v589_v49 = vadd.f32 %v1116_v36, %v1004_v32  ;;  %v583_v41 = vpop.f32.mrb[19].mxu0  ;;  %v741_v25 = vld [vmem:[#allocation5 + $0xc8] sm:$0xff] }
 0x166   :  { %v764_v42 = vadd.f32 %v732_v27, %v700_v50  ;;  %v584_v15 = vadd.f32 %v583_v41, %v293_v26  ;;  %v740_v27 = vld [vmem:[#allocation5 + $0xc0] sm:$0xff]  ;;  %v678_v26 = vmul.f32 3.0, %v1601_v12  ;;  %v743_v41 = vld [vmem:[#allocation5 + $0xd8] sm:$0xff] }
 0x167   :  { %797 = vst [vmem:[#allocation10 + $0x88] sm:$0xff] %v765_v38  ;;  %v703_v43 = vsub.f32 %v589_v49, %v671_v35  ;;  %v1007_v47 = vpop.f32.mrb[20].mxu1  ;;  %v679_v35 = vmul.f32 3.0, %v1603_v13 }
 0x168   :  { %796 = vst [vmem:[#allocation10 + $0x80] sm:$0xff] %v764_v42  ;;  %v702_v53 = vsub.f32 %v584_v15, %v670_v37  ;;  %v1119_v48 = vpop.f32.mrb[20].mxu0  ;;  %v303_v14 = vpop.f32.mrb[21].mxu1  ;;  %v742_v15 = vld [vmem:[#allocation5 + $0xd0] sm:$0xff] }
 0x169   :  { %v767_v54 = vadd.f32 %v735_v34, %v703_v43  ;;  %v599_v52 = vadd.f32 %v1119_v48, %v1007_v47  ;;  %v593_v55 = vpop.f32.mrb[21].mxu0 }
 0x16a   :  { %v766_v56 = vadd.f32 %v734_v44, %v702_v53  ;;  %v594_v60 = vadd.f32 %v593_v55, %v303_v14  ;;  %v681_v44 = vmul.f32 3.0, %v1611_v22  ;;  %v680_v53 = vmul.f32 3.0, %v1609_v19 }
 0x16b   :  { %799 = vst [vmem:[#allocation10 + $0x98] sm:$0xff] %v767_v54  ;;  %v705_v40 = vsub.f32 %v599_v52, %v673_v33  ;;  %v1010_v0 = vpop.f32.mrb[22].mxu1  ;;  %v745_v54 = vld [vmem:[#allocation5 + $0xe8] sm:$0xff] }
 0x16c   :  { %798 = vst [vmem:[#allocation10 + $0x90] sm:$0xff] %v766_v56  ;;  %v704_v58 = vsub.f32 %v594_v60, %v672_v51  ;;  %v1122_v1 = vpop.f32.mrb[22].mxu0  ;;  %v313_v39 = vpop.f32.mrb[23].mxu1  ;;  %v744_v56 = vld [vmem:[#allocation5 + $0xe0] sm:$0xff]  ;;  %v683_v60 = vmul.f32 3.0, %v1619_v30 }
 0x16d   :  { %v769_v3 = vadd.f32 %v737_v59, %v705_v40  ;;  %v609_v57 = vadd.f32 %v1122_v1, %v1010_v0  ;;  %v603_v7 = vpop.f32.mrb[23].mxu0  ;;  %v682_v0 = vmul.f32 3.0, %v1617_v29 }
 0x16e   :  { %v768_v20 = vadd.f32 %v736_v61, %v704_v58  ;;  %v604_v2 = vadd.f32 %v603_v7, %v313_v39  ;;  %v747_v39 = vld [vmem:[#allocation5 + $0xf8] sm:$0xff] }
 0x16f   :  { %801 = vst [vmem:[#allocation10 + $0xa8] sm:$0xff] %v769_v3  ;;  %v707_v11 = vsub.f32 %v609_v57, %v675_v21  ;;  %v1013_v46 = vpop.f32.mrb[24].mxu1  ;;  %v746_v57 = vld [vmem:[#allocation5 + $0xf0] sm:$0xff] }
 0x170   :  { %800 = vst [vmem:[#allocation10 + $0xa0] sm:$0xff] %v768_v20  ;;  %v706_v63 = vsub.f32 %v604_v2, %v674_v4  ;;  %v1125_v18 = vpop.f32.mrb[24].mxu0  ;;  %v323_v23 = vpop.f32.mrb[25].mxu1 }
 0x171   :  { %v771_v45 = vadd.f32 %v739_v8, %v707_v11  ;;  %v619_v62 = vadd.f32 %v1125_v18, %v1013_v46  ;;  %v613_v28 = vpop.f32.mrb[25].mxu0 }
 0x172   :  { %v770_v24 = vadd.f32 %v738_v16, %v706_v63  ;;  %v614_v31 = vadd.f32 %v613_v28, %v323_v23 }
 0x173   :  { %803 = vst [vmem:[#allocation10 + $0xb8] sm:$0xff] %v771_v45  ;;  %v709_v9 = vsub.f32 %v619_v62, %v677_v17  ;;  %v1016_v32 = vpop.f32.mrb[26].mxu1 }
 0x174   :  { %802 = vst [vmem:[#allocation10 + $0xb0] sm:$0xff] %v770_v24  ;;  %v708_v6 = vsub.f32 %v614_v31, %v676_v10  ;;  %v1128_v50 = vpop.f32.mrb[26].mxu0  ;;  %v333_v36 = vpop.f32.mrb[27].mxu1 }
 0x175   :  { %v773_v37 = vadd.f32 %v741_v25, %v709_v9  ;;  %v629_v5 = vadd.f32 %v1128_v50, %v1016_v32  ;;  %v623_v38 = vpop.f32.mrb[27].mxu0 }
 0x176   :  { %v772_v49 = vadd.f32 %v740_v27, %v708_v6  ;;  %v624_v42 = vadd.f32 %v623_v38, %v333_v36 }
 0x177   :  { %805 = vst [vmem:[#allocation10 + $0xc8] sm:$0xff] %v773_v37  ;;  %v711_v34 = vsub.f32 %v629_v5, %v679_v35  ;;  %v1019_v43 = vpop.f32.mrb[28].mxu1 }
 0x178   :  { %804 = vst [vmem:[#allocation10 + $0xc0] sm:$0xff] %v772_v49  ;;  %v710_v13 = vsub.f32 %v624_v42, %v678_v26  ;;  %v1131_v47 = vpop.f32.mrb[28].mxu0  ;;  %v343_v33 = vpop.f32.mrb[29].mxu1 }
 0x179   :  { %v775_v48 = vadd.f32 %v743_v41, %v711_v34  ;;  %v639_v12 = vadd.f32 %v1131_v47, %v1019_v43  ;;  %v633_v14 = vpop.f32.mrb[29].mxu0 }
 0x17a   :  { %v774_v51 = vadd.f32 %v742_v15, %v710_v13  ;;  %v634_v52 = vadd.f32 %v633_v14, %v343_v33 }
 0x17b   :  { %807 = vst [vmem:[#allocation10 + $0xd8] sm:$0xff] %v775_v48  ;;  %v713_v55 = vsub.f32 %v639_v12, %v681_v44  ;;  %v1022_v59 = vpop.f32.mrb[30].mxu1 }
 0x17c   :  { %806 = vst [vmem:[#allocation10 + $0xd0] sm:$0xff] %v774_v51  ;;  %v712_v22 = vsub.f32 %v634_v52, %v680_v53  ;;  %v1134_v40 = vpop.f32.mrb[30].mxu0  ;;  %v353_v61 = vpop.f32.mrb[31].mxu1 }
 0x17d   :  { %v777_v21 = vadd.f32 %v745_v54, %v713_v55  ;;  %v649_v19 = vadd.f32 %v1134_v40, %v1022_v59  ;;  %v643_v58 = vpop.f32.mrb[31].mxu0 }
 0x17e   :  { %v776_v1 = vadd.f32 %v744_v56, %v712_v22  ;;  %v644_v4 = vadd.f32 %v643_v58, %v353_v61 }
 0x17f   :  { %809 = vst [vmem:[#allocation10 + $0xe8] sm:$0xff] %v777_v21  ;;  %v715_v3 = vsub.f32 %v649_v19, %v683_v60 }
 0x180   :  { %808 = vst [vmem:[#allocation10 + $0xe0] sm:$0xff] %v776_v1  ;;  %v714_v7 = vsub.f32 %v644_v4, %v682_v0 }
 0x181   :  { %v779_v30 = vadd.f32 %v747_v39, %v715_v3 }
 0x182   :  { %v778_v20 = vadd.f32 %v746_v57, %v714_v7 }
 0x183   :  { %811 = vst [vmem:[#allocation10 + $0xf8] sm:$0xff] %v779_v30 }
 0x184   :  { %810 = vst [vmem:[#allocation10 + $0xf0] sm:$0xff] %v778_v20 }
 0x185   :  { %1369 = shalt.err (!%p1366_p8)
}
 0x186   :  { %s1370_s15 = scalar_lea.hbm %s1701_s4, 4096 }
 0x187   :  { %p1371_p9 = scmp.ne.s32.totalorder %s1701_s4, %s1370_s15  ;;  %p1374_p10 = scmp.lt.u32.totalorder %s1370_s15, %s1701_s4 }
 0x189   :  { %p1376_p11 = pnand %p1374_p10, %p1371_p9 }
 0x18b   :  { %1379 = shalt.err (!%p1376_p11)
}
 0x18c   :  { %823 = dma.vmem_to_hbm [thread:$0]  %s818_s12, 4096, %s1701_s4, [#allocation4], %s1390_s27, %s1390_s27, %s1391_s28  }
 0x18d   :  { %1386 = dma.done.wait [#allocation4], 4096  }
 0x18e   :  { %1387 = vsyncadd [#allocation4], 4294963200 }
 0x18f   :  { %827 = vsyncpa [#allocation3], 1 }
 0x190   :  { %828 = vsyncpa [#allocation6], 1 }
 0x191   :  { %829 = vsyncpa [#allocation9], 1 }
 0x192   :  { %830 = vsyncpa [#allocation4], 1 }

</bundles_post_ra>
